<compile_context>
chip_gen: v6e
topology: v6e:2x2x1
jax: 0.10.0
libtpu: 0.0.40
codegen_flags: <defaults>
</compile_context>

<pallas_src>
import jax
import jax.numpy as jnp
from jax.experimental import pallas as pl
from jax.experimental.pallas import tpu as pltpu


_IMAGENET_MEAN = (0.485, 0.456, 0.406)
_IMAGENET_STD = (0.229, 0.224, 0.225)

# Rows of 128 lanes per grid step per channel plane (256K elems ~ 1 MiB f32).
_MAX_TILE_ROWS = 2048


def _round_up(a, m):
    return ((a + m - 1) // m) * m


def _make_kernel(scale, bias, c_in):
    """Kernel closure with per-channel affine constants baked in as floats."""
    s = tuple(float(v) for v in scale)
    b = tuple(float(v) for v in bias)

    def kernel(x_ref, o_ref):
        # x_ref: VMEM (TB, c_in, TS, 128)   c_in in {1, 3}
        # o_ref: VMEM (TB, 3,    TS, 128)
        x = x_ref[...].astype(jnp.float32)
        for c in range(3):
            src = x[:, 0] if c_in == 1 else x[:, c]   # (TB, TS, 128)
            o_ref[:, c] = src * s[c] + b[c]

    return kernel


def classifier_inputs(x, mean=_IMAGENET_MEAN, std=_IMAGENET_STD):
    """x: (N, C, H, W) with C in {1, 3}.  Returns float32 (N, 3, H, W):
       ((x / 2 + 0.5) expanded to 3 channels - mean) / std
    mean/std must be host-side constants (Python/numpy sequences)."""
    N, C, H, W = x.shape
    assert C in (1, 3), "expand([-1, 3, -1, -1]) requires channel dim of 1 or 3"

    mean = tuple(float(m) for m in mean)
    std = tuple(float(v) for v in std)
    scale = tuple(0.5 / v for v in std)                        # x * 0.5/std
    bias = tuple((0.5 - m) / v for m, v in zip(mean, std))     # + (0.5-mean)/std

    P = H * W
    R = pl.cdiv(P, 128)          # rows of 128 lanes
    Pp = R * 128

    # Layout plumbing: NCHW contiguous -> (N, C, P) view; pad flat spatial
    # axis to a 128 multiple only if needed, then (N, C, R, 128) lane-dense.
    xf = x.reshape(N, C, P)
    if Pp != P:
        xf = jnp.pad(xf, ((0, 0), (0, 0), (0, Pp - P)))
    x4 = xf.reshape(N, C, R, 128)

    # ---- tile selection -----------------------------------------------------
    if R >= _MAX_TILE_ROWS:
        TS, TB = _MAX_TILE_ROWS, 1                 # big image: tile rows
    else:
        TS = R                                     # whole plane per step (legal: full extent)
        TB = max(1, min(N, _MAX_TILE_ROWS // max(R, 1)))   # pack small images per step
    grid_n = pl.cdiv(N, TB)
    grid_r = pl.cdiv(R, TS)
    # Keep >= 2 parallel grid steps when possible (v7x has 2 TensorCores).
    if grid_n * grid_r == 1:
        if N >= 2:
            TB = pl.cdiv(N, 2)
            grid_n = pl.cdiv(N, TB)
        elif R >= 16:
            TS = _round_up(pl.cdiv(R, 2), 8)
            grid_r = pl.cdiv(R, TS)
    grid = (grid_n, grid_r)

    kernel = _make_kernel(scale, bias, C)

    out4 = pl.pallas_call(
        kernel,
        out_shape=jax.ShapeDtypeStruct((N, 3, R, 128), jnp.float32),
        grid_spec=pltpu.PrefetchScalarGridSpec(
            num_scalar_prefetch=0,
            grid=grid,
            in_specs=[
                pl.BlockSpec((TB, C, TS, 128), lambda n, r: (n, 0, r, 0)),
            ],
            out_specs=pl.BlockSpec((TB, 3, TS, 128), lambda n, r: (n, 0, r, 0)),
        ),
        compiler_params=pltpu.CompilerParams(
            dimension_semantics=("parallel", "parallel"),
            vmem_limit_bytes=32 * 1024 * 1024,
        ),
    )(x4)

    out = out4.reshape(N, 3, Pp)
    if Pp != P:
        out = out[:, :, :P]
    return out.reshape(N, 3, H, W)


if __name__ == "__main__":
    key = jax.random.PRNGKey(0)

    mean = jnp.array(_IMAGENET_MEAN, dtype=jnp.float32).reshape(1, 3, 1, 1)
    std = jnp.array(_IMAGENET_STD, dtype=jnp.float32).reshape(1, 3, 1, 1)

    # Grayscale case (C == 1): exercises the channel expand to 3.
    N, C, H, W = 2, 1, 16, 16
    x1 = jax.random.normal(key, (N, C, H, W), dtype=jnp.float32)
    out1 = jax.block_until_ready(classifier_inputs(x1))
    ref1 = (jnp.broadcast_to(x1 * 0.5 + 0.5, (N, 3, H, W)) - mean) / std
    assert out1.shape == (N, 3, H, W)
    assert jnp.allclose(out1, ref1, atol=1e-5, rtol=1e-5)

    # RGB case (C == 3): passthrough channels.
    x3 = jax.random.normal(jax.random.fold_in(key, 1), (N, 3, H, W),
                           dtype=jnp.float32)
    out3 = jax.block_until_ready(classifier_inputs(x3))
    ref3 = ((x3 * 0.5 + 0.5) - mean) / std
    assert jnp.allclose(out3, ref3, atol=1e-5, rtol=1e-5)

    # Ragged spatial case (H*W not a multiple of 128): exercises pad+slice path.
    xr = jax.random.normal(jax.random.fold_in(key, 2), (1, 1, 5, 7),
                           dtype=jnp.float32)
    outr = jax.block_until_ready(classifier_inputs(xr))
    refr = (jnp.broadcast_to(xr * 0.5 + 0.5, (1, 3, 5, 7)) - mean) / std
    assert outr.shape == (1, 3, 5, 7)
    assert jnp.allclose(outr, refr, atol=1e-5, rtol=1e-5)

    print("KERNEL_OK")
</pallas_src>

<mosaic_0001>
module attributes {stable_mosaic.version = 11 : i64} {
  func.func @kernel(%arg0: i32, %arg1: i32, %arg2: memref<1x1x2x128xf32, #tpu.memory_space<vmem>>, %arg3: memref<1x3x2x128xf32, #tpu.memory_space<vmem>>) attributes {dimension_semantics = [#tpu.dimension_semantics<parallel>, #tpu.dimension_semantics<parallel>], iteration_bounds = array<i64: 2, 1>, scalar_prefetch = 0 : i64, scratch_operands = 0 : i64, tpu.core_type = #tpu.core_type<tc>, window_params = [{transform_indices = @transform_0, window_bounds = array<i64: 1, 1, 2, 128>}, {transform_indices = @transform_1, window_bounds = array<i64: 1, 3, 2, 128>}]} {
    %c0 = arith.constant 0 : index
    %c0_0 = arith.constant 0 : index
    %c0_1 = arith.constant 0 : index
    %c0_2 = arith.constant 0 : index
    %0 = vector.load %arg2[%c0, %c0_0, %c0_1, %c0_2] : memref<1x1x2x128xf32, #tpu.memory_space<vmem>>, vector<1x1x2x128xf32>
    %1 = vector.shape_cast %0 : vector<1x1x2x128xf32> to vector<1x2x128xf32>
    %cst = arith.constant 2.18340611 : f32
    %2 = vector.broadcast %cst : f32 to vector<1x2x128xf32>
    %3 = arith.mulf %1, %2 : vector<1x2x128xf32>
    %cst_3 = arith.constant 0.0655021816 : f32
    %4 = vector.broadcast %cst_3 : f32 to vector<1x2x128xf32>
    %5 = arith.addf %3, %4 : vector<1x2x128xf32>
    %c0_4 = arith.constant 0 : index
    %c0_5 = arith.constant 0 : index
    %c0_6 = arith.constant 0 : index
    %c0_7 = arith.constant 0 : index
    %6 = vector.load %arg3[%c0_4, %c0_5, %c0_6, %c0_7] : memref<1x3x2x128xf32, #tpu.memory_space<vmem>>, vector<1x1x2x128xf32>
    %7 = vector.shape_cast %6 : vector<1x1x2x128xf32> to vector<1x2x128xf32>
    %8 = vector.shape_cast %5 : vector<1x2x128xf32> to vector<1x1x2x128xf32>
    tpu.vector_store %arg3[%c0_4, %c0_5, %c0_6, %c0_7], %8 {strides = array<i32>} : memref<1x3x2x128xf32, #tpu.memory_space<vmem>>, vector<1x1x2x128xf32>,
    %9 = vector.shape_cast %0 : vector<1x1x2x128xf32> to vector<1x2x128xf32>
    %cst_8 = arith.constant 2.23214293 : f32
    %10 = vector.broadcast %cst_8 : f32 to vector<1x2x128xf32>
    %11 = arith.mulf %9, %10 : vector<1x2x128xf32>
    %cst_9 = arith.constant 0.196428567 : f32
    %12 = vector.broadcast %cst_9 : f32 to vector<1x2x128xf32>
    %13 = arith.addf %11, %12 : vector<1x2x128xf32>
    %c0_10 = arith.constant 0 : index
    %c1 = arith.constant 1 : index
    %c0_11 = arith.constant 0 : index
    %c0_12 = arith.constant 0 : index
    %14 = vector.load %arg3[%c0_10, %c1, %c0_11, %c0_12] : memref<1x3x2x128xf32, #tpu.memory_space<vmem>>, vector<1x1x2x128xf32>
    %15 = vector.shape_cast %14 : vector<1x1x2x128xf32> to vector<1x2x128xf32>
    %16 = vector.shape_cast %13 : vector<1x2x128xf32> to vector<1x1x2x128xf32>
    tpu.vector_store %arg3[%c0_10, %c1, %c0_11, %c0_12], %16 {strides = array<i32>} : memref<1x3x2x128xf32, #tpu.memory_space<vmem>>, vector<1x1x2x128xf32>,
    %17 = vector.shape_cast %0 : vector<1x1x2x128xf32> to vector<1x2x128xf32>
    %cst_13 = arith.constant 2.22222233 : f32
    %18 = vector.broadcast %cst_13 : f32 to vector<1x2x128xf32>
    %19 = arith.mulf %17, %18 : vector<1x2x128xf32>
    %cst_14 = arith.constant 0.417777777 : f32
    %20 = vector.broadcast %cst_14 : f32 to vector<1x2x128xf32>
    %21 = arith.addf %19, %20 : vector<1x2x128xf32>
    %c0_15 = arith.constant 0 : index
    %c2 = arith.constant 2 : index
    %c0_16 = arith.constant 0 : index
    %c0_17 = arith.constant 0 : index
    %22 = vector.load %arg3[%c0_15, %c2, %c0_16, %c0_17] : memref<1x3x2x128xf32, #tpu.memory_space<vmem>>, vector<1x1x2x128xf32>
    %23 = vector.shape_cast %22 : vector<1x1x2x128xf32> to vector<1x2x128xf32>
    %24 = vector.shape_cast %21 : vector<1x2x128xf32> to vector<1x1x2x128xf32>
    tpu.vector_store %arg3[%c0_15, %c2, %c0_16, %c0_17], %24 {strides = array<i32>} : memref<1x3x2x128xf32, #tpu.memory_space<vmem>>, vector<1x1x2x128xf32>,
    return
  }
  func.func @transform_0(%arg0: i32, %arg1: i32) -> (i32, i32, i32, i32) {
    %c0_i32 = arith.constant 0 : i32
    %c0_i32_0 = arith.constant 0 : i32
    %c0_i32_1 = arith.constant 0 : i32
    return %arg0, %c0_i32, %arg1, %c0_i32_0 : i32, i32, i32, i32
  }
  func.func @transform_1(%arg0: i32, %arg1: i32) -> (i32, i32, i32, i32) {
    %c0_i32 = arith.constant 0 : i32
    %c0_i32_0 = arith.constant 0 : i32
    %c0_i32_1 = arith.constant 0 : i32
    return %arg0, %c0_i32, %arg1, %c0_i32_0 : i32, i32, i32, i32
  }
}

</mosaic_0001>

<bundles_post_ra>
// kernel: tpu_custom_call.1
= control target key start
LH: loop header
LB: loop body
LE: loop exit
PB: predicated region body
PF: predicated region fallthrough
CT: control target
= control target key end

     0   :  { %6 = vsyncpa [#allocation3], 0  ;;  %s612_s0 = inlined_call_operand.hbm [shape: f32[2,1,2,128], index: 0, kind: input, shape index: {}]   ;;  %s613_s1 = inlined_call_operand.hbm [shape: f32[2,3,2,128], index: 1, kind: output, shape index: {}]  }
   0x1   :  { %8 = vsyncpa [#allocation3 + $0x1], 0 }
   0x2   :  { %9 = vsyncpa [#allocation4], 0 }
   0x3   :  { %11 = vsyncpa [#allocation4 + $0x1], 0  ;;  %s463_s6 = smov 0   ;;  %s465_s7 = smov 0  }
   0x4   :  { %s467_s8 = smov 0   ;;  %s469_s9 = smov 0  }
   0x5   :  { %s471_s10 = smov 0   ;;  %s473_s11 = smov 0  }
   0x6 LB: > { %s260_s12 = sadd.s32 4294967295, %s447_s11   ;;  %s261_s13 = sadd.s32 4294967294, %s447_s11   ;;  %s447_s11 = sphi %s473_s11, %s17_s11   ;;  %s443_s10 = sphi %s471_s10, %s625_s10   ;;  %s439_s9 = sphi %s469_s9, %s624_s9   ;;  %s435_s8 = sphi %s467_s8, %s623_s8   ;;  %s431_s7 = sphi %s465_s7, %s622_s7   ;;  %s427_s6 = sphi %s463_s6, %s621_s6  }
   0x7   : > { %s29_s14 = sadd.s32 1, %s443_s10  ;;  %s38_s15 = sadd.s32 1, %s435_s8 }
   0x8   : > { %p31_p0 = scmp.ge.s32.totalorder %s29_s14, 2  ;;  %p45_p1 = scmp.ne.s32.totalorder %s435_s8, %s431_s7 }
   0x9   : > { %p46_p2 = scmp.eq.s32.totalorder %s447_s11, 0  ;;  %p51_p3 = scmp.ne.s32.totalorder %s431_s7, %s427_s6 }
   0xa   : > { %s627_s14 = smov (%p31_p0, %s29_s14), 0  ;;  %p52_p5 = scmp.eq.s32.totalorder %s260_s12, 0 }
   0xb   : > { %p504_p4 = por %p46_p2, %p45_p1  ;;  %s33_s17 = ssub.s32 %s443_s10, %s627_s14 }
   0xc   : > { %p77_p6 = scmp.eq.s32.totalorder %s260_s12, 1  ;;  %p36_p7 = scmp.eq.s32.totalorder %s33_s17, 0 }
   0xd   : > { %p510_p8 = por %p52_p5, %p51_p3  ;;  %p83_p10 = scmp.eq.s32.totalorder %s261_s13, 1 }
   0xe   : > { %p514_p9 = por %p77_p6, %p45_p1  ;;  %p287_p13 = scmp.lt.s32.totalorder %s447_s11, 2 }
   0xf   : > { %s519_s20 = scalar_select %p36_p7, %s435_s8, %s38_s15  }
  0x10   : > { %p521_p11 = por %p83_p10, %p51_p3  ;;  %s103_s22 = sand.u32 1, %s435_s8  }
  0x11   : > { %s264_s23 = sshll.u32 %s103_s22, 1  ;;  %s265_s24 = sshll.u32 %s443_s10, 5 }
  0x12   : > { %s617_s21 = scalar_select %p521_p11, 1, 0 }
  0x13   : > { %s113_s27 = scalar_lea.hbm %s612_s0, %s265_s24  ;;  %s107_s28 = scalar_lea.vmem [#allocation2], %s264_s23 }
  0x14   : > { %s115_s29 = sshll.u32 %s107_s28, 4  ;;  %p534_p0 = pnand %p287_p13, %p504_p4  ;;  %s116_s29 = int_to_ptr.vmem [resolvable:$true] %s115_s29 }
  0x15   : > { %p266_p1 = scmp.ge.s32.totalorder %s447_s11, 1  ;;  %p120_p2 = scmp.lt.s32.totalorder %s447_s11, 3 }
  0x16   : > { %s104_s2 = scalar_lea.sflag [#allocation3], %s103_s22  ;;  %p341_p3 = pneg %p534_p0 }
  0x17   : > { %s352_s3 = scalar_lea.vmem %s116_s29, 32  ;;  %s449_s4 = smov [#allocation2]  }
  0x18   : > { %p353_p5 = scmp.ne.s32.totalorder %s116_s29, %s352_s3  ;;  %s357_s5 = sshll.u32 %s449_s4, 4  ;;  %s358_s5 = int_to_ptr.vmem [resolvable:$false] %s357_s5 }
  0x19   : > { %s359_s12 = scalar_lea.vmem %s358_s5, 64  ;;  %p360_p10 = scmp.lt.s32.totalorder %s116_s29, %s358_s5 }
  0x1a   : > { %p355_p6 = pnand %p353_p5, %p341_p3  ;;  %p361_p12 = scmp.lt.s32.totalorder %s359_s12, %s352_s3 }
  0x1c   : > { %p356_p7 = pneg %p355_p6  ;;  %p362_p4 = por %p361_p12, %p360_p10 }
  0x1e   : > { %p363_p13 = pnand %p362_p4, %p356_p7 }
  0x20   : > { %366 = shalt.err (!%p363_p13)
}
  0x21   : > { %282 = dma.hbm_to_vmem [thread:$0]  (!%p534_p0), %s113_s27, 32, %s116_s29, %s104_s2  }
  0x22   : > { %p121_p11 = pnand %p266_p1, %p120_p2 }
  0x23   : > { %s549_s13 = sand.u32 (!%p121_p11), 1, %s431_s7  }
  0x24   : > { %124 = sbr.rel (%p121_p11) target bundleno = 68 (0x44), region = 24  ;;  %s267_s15 = sshll.u32 (!%p121_p11), %s549_s13, 1 }
  0x25   : > { %s127_s16 = scalar_lea.sflag (!%p121_p11), [#allocation3], %s549_s13  ;;  %s130_s17 = scalar_lea.vmem (!%p121_p11), [#allocation2], %s267_s15 }
  0x29   : > { %418 = dma.done.wait (%p510_p8), %s127_s16, 32  }
  0x2a   : > { %420 = vsyncadd (%p510_p8), %s127_s16, 4294967264  ;;  %s273_s22 = smul.u32 6, %s549_s13  ;;  %v149_v0 = vld [vmem:[%s130_s17] sm:$0x3]  ;;  %s450_s29 = smov [#allocation5]  }
  0x2b   : > { %s274_s23 = smul.u32 96, %s439_s9  ;;  %v150_v1 = vmul.f32 2.183406, %v149_v0  ;;  %v153_v2 = vmul.f32 2.232143, %v149_v0  ;;  %s162_s9 = scalar_lea.sflag [#allocation4], %s549_s13 }
  0x2c   : > { %s148_s24 = scalar_lea.vmem [#allocation5], %s273_s22  ;;  %v157_v3 = vmul.f32 2.2222223, %v149_v0  ;;  %s371_s30 = sshll.u32 %s450_s29, 4  ;;  %s372_s30 = int_to_ptr.vmem [resolvable:$false] %s371_s30 }
  0x2d   : > { %s176_s25 = sshll.u32 %s148_s24, 4  ;;  %v151_v4 = vadd.f32 0.06550218, %v150_v1  ;;  %v154_v5 = vadd.f32 0.19642857, %v153_v2  ;;  %s564_s27 = scalar_lea.hbm %s613_s1, %s274_s23  ;;  %s559_s25 = int_to_ptr.vmem [resolvable:$true] %s176_s25 }
  0x2e   : > { %v158_v6 = vadd.f32 0.41777778, %v157_v3  ;;  %s367_s28 = scalar_lea.vmem %s559_s25, 96  ;;  %s373_s2 = scalar_lea.vmem %s372_s30, 192 }
  0x2f   : > { %152 = vst [vmem:[%s148_s24] sm:$0x3] %v151_v4  ;;  %268 = vst [vmem:[%s148_s24 + $0x2] sm:$0x3] %v154_v5  ;;  %p368_p8 = scmp.ne.s32.totalorder %s559_s25, %s367_s28  ;;  %p374_p0 = scmp.lt.s32.totalorder %s559_s25, %s372_s30 }
  0x30   : > { %269 = vst [vmem:[%s148_s24 + $0x4] sm:$0x3] %v158_v6  ;;  %p375_p1 = scmp.lt.s32.totalorder %s373_s2, %s367_s28 }
  0x31   : > { %p369_p11 = pnand %p368_p8, %p514_p9 }
  0x32   : > { %p376_p2 = por %p375_p1, %p374_p0 }
  0x33   : > { %p370_p12 = pneg %p369_p11 }
  0x35   : > { %p377_p3 = pnand %p376_p2, %p370_p12 }
  0x37   : > { %380 = shalt.err (!%p377_p3)
}
  0x38   : > { %s381_s3 = scalar_lea.hbm %s564_s27, 96  ;;  %s385_s12 = scalar_lea.hbm %s613_s1, 192 }
  0x39   : > { %p382_p5 = scmp.ne.s32.totalorder %s564_s27, %s381_s3  ;;  %p386_p10 = scmp.lt.s32.totalorder %s564_s27, %s613_s1 }
  0x3a   : > { %p387_p4 = scmp.lt.s32.totalorder %s385_s12, %s381_s3 }
  0x3b   : > { %p383_p6 = pnand %p382_p5, %p514_p9 }
  0x3c   : > { %p388_p13 = por %p387_p4, %p386_p10 }
  0x3d   : > { %p384_p7 = pneg %p383_p6 }
  0x3f   : > { %p389_p8 = pnand %p388_p13, %p384_p7 }
  0x41   : > { %392 = shalt.err (!%p389_p8)
}
  0x42   : > { %s451_s17 = smov 32   ;;  %s452_s22 = smov 2  }
  0x43   : > { %277 = dma.vmem_to_hbm [thread:$0]  (%p514_p9), %s559_s25, 96, %s564_s27, %s162_s9, %s451_s17, %s451_s17, %s452_s22  }
  0x44 PF: > { %s191_s23 = sand.u32 1, %s427_s6   ;;  %p619_p11 = scmp.ne.s32.totalorder %s617_s21, 0 }
  0x45   : > { %p620_p12 = scmp.ge.s32.totalorder %s447_s11, 2  ;;  %s192_s24 = scalar_lea.sflag [#allocation4], %s191_s23 }
  0x47   : > { %p284_p0 = pnand %p620_p12, %p619_p11 }
  0x49   : > { %p285_p1 = pneg %p284_p0 }
  0x4b   : > { %422 = dma.done.wait (%p285_p1), %s192_s24, 96  }
  0x4c   : > { %424 = vsyncadd (%p285_p1), %s192_s24, 4294967200  ;;  %s17_s11 = sadd.s32 1, %s447_s11   ;;  %s621_s6 = smov %s431_s7 }
  0x4d   : > { %p14_p2 = scmp.ge.s32.totalorder %s17_s11, 4   ;;  %s622_s7 = smov %s435_s8 }
  0x4e   : > { %s623_s8 = smov %s519_s20  ;;  %s624_s9 = smov %s443_s10 }
  0x4f   : > { %s625_s10 = smov %s627_s14  ;;  %16 = sbr.rel (!%p14_p2) target bundleno = 6 (0x6), region = 71 }
  0x54   :  { %197 = vsyncpa [#allocation3], 1 }
  0x55   :  { %199 = vsyncpa [#allocation3 + $0x1], 1 }
  0x56   :  { %200 = vsyncpa [#allocation4], 1 }
  0x57   :  { %202 = vsyncpa [#allocation4 + $0x1], 1 }

</bundles_post_ra>
